<compile_context>
chip_gen: v7x
topology: tpu7x:2x2x1
jax: 0.10.0
libtpu: 0.0.40
codegen_flags: <defaults>
</compile_context>

<pallas_src>
import functools

import jax
import jax.numpy as jnp
import numpy as np
from jax.experimental import pallas as pl
from jax.experimental.pallas import tpu as pltpu


def _lstm_kernel(x_ref, wih_ref, whh_ref, b_ref, wfc_ref, bfc_ref,
                 out_ref, *, T, B, H):
    """Single-invocation LSTM forward + FC head.

    x_ref   : (T*B, D)   time-major, batch-padded input
    wih_ref : (D, 4H)    W_ih^T
    whh_ref : (H, 4H)    W_hh^T
    b_ref   : (1, 4H)    b_ih + b_hh
    wfc_ref : (H, 1)     W_fc^T
    bfc_ref : (1, 1)     b_fc
    out_ref : (B, 1)
    """
    # ---- off-critical-path: input projection for every timestep at once ----
    # One big MXU matmul (T*B rows) + one bias broadcast; kept in vregs
    # (8 vregs at these sizes), no VMEM scratch round-trip.
    gx = jnp.dot(x_ref[...], wih_ref[...],
                 preferred_element_type=jnp.float32) + b_ref[...]   # (T*B, 4H)

    # ---- hoisted loop invariants ----
    whh = whh_ref[...]                                              # (H, 4H)
    lane = jax.lax.broadcasted_iota(jnp.int32, (B, 4 * H), 1)
    g_lanes = (lane >= 2 * H) & (lane < 3 * H)                      # 'g' gate lanes
    # sigmoid(x) = 0.5 * (1 + tanh(x / 2)): pre-scale sigmoid lanes by 0.5 so a
    # single full-tile tanh covers all four gates (one EUP pass per step).
    act_scale = jnp.where(g_lanes, jnp.float32(1.0), jnp.float32(0.5))

    def activate(gates):
        t = jnp.tanh(gates * act_scale)
        act = jnp.where(g_lanes, t, 0.5 * t + 0.5)
        return (act[:, 0 * H:1 * H], act[:, 1 * H:2 * H],
                act[:, 2 * H:3 * H], act[:, 3 * H:4 * H])

    # ---- t = 0: h = c = 0, so skip h @ W_hh and f * c ----
    i_g, _f_g, g_g, o_g = activate(gx[0:B, :])
    c = i_g * g_g
    h = o_g * jnp.tanh(c)

    # ---- recurrent chain: fully unrolled static time loop ----
    # NOTE: relying on Mosaic to keep the (H,4H) RHS staged in the MXU across
    # the unrolled jnp.dot calls; explicit matmul_push_rhs/acc_lhs driving is
    # not needed at this size.
    for t in range(1, T):
        gates = gx[t * B:(t + 1) * B, :] + jnp.dot(
            h, whh, preferred_element_type=jnp.float32)             # (B, 4H)
        i_g, f_g, g_g, o_g = activate(gates)
        c = f_g * c + i_g * g_g
        h = o_g * jnp.tanh(c)

    # ---- fused FC head on the last hidden state ----
    out_ref[...] = (jnp.dot(h, wfc_ref[...],
                            preferred_element_type=jnp.float32)
                    + bfc_ref[...]).astype(out_ref.dtype)


@jax.jit
def lstm_model_forward(x, w_ih, w_hh, b_ih, b_hh, w_fc, b_fc):
    """x: (B, T, D) float32 (batch_first, like PyTorch).  Returns (B, 1)."""
    B, T, D = x.shape
    H = w_hh.shape[1]                       # w_hh: (4H, H)

    # Pad batch up to a full f32 sublane group (8): free MXU/vreg rows.
    B_pad = max(8, ((B + 7) // 8) * 8)
    x_pad = jnp.zeros((B_pad, T, D), x.dtype).at[:B].set(x)

    # Time-major, flattened so the input projection is one big matmul.
    x_tb = jnp.transpose(x_pad, (1, 0, 2)).reshape(T * B_pad, D)    # (T*B, D)

    wih_t = jnp.transpose(w_ih)             # (D, 4H)
    whh_t = jnp.transpose(w_hh)             # (H, 4H)
    bias = (b_ih + b_hh).reshape(1, 4 * H)  # (1, 4H)
    wfc_t = jnp.transpose(w_fc)             # (H, 1)
    bfc = b_fc.reshape(1, 1)                # (1, 1)

    kernel = functools.partial(_lstm_kernel, T=T, B=B_pad, H=H)

    out = pl.pallas_call(
        kernel,
        out_shape=jax.ShapeDtypeStruct((B_pad, 1), jnp.float32),
        # No grid: a single invocation with everything VMEM-resident
        # (total footprint here is well under 100 KiB on all generations).
        in_specs=[pl.BlockSpec(memory_space=pltpu.MemorySpace.VMEM)] * 6,
        out_specs=pl.BlockSpec(memory_space=pltpu.MemorySpace.VMEM),
    )(x_tb, wih_t, whh_t, bias, wfc_t, bfc)

    return out[:B]


def _reference_forward(x, w_ih, w_hh, b_ih, b_hh, w_fc, b_fc):
    """Pure-JAX reference of the PyTorch module's forward."""
    B, T, D = x.shape
    H = w_hh.shape[1]
    h = jnp.zeros((B, H), jnp.float32)
    c = jnp.zeros((B, H), jnp.float32)

    def step(carry, x_t):
        h, c = carry
        gates = x_t @ w_ih.T + h @ w_hh.T + b_ih + b_hh
        i = jax.nn.sigmoid(gates[:, 0 * H:1 * H])
        f = jax.nn.sigmoid(gates[:, 1 * H:2 * H])
        g = jnp.tanh(gates[:, 2 * H:3 * H])
        o = jax.nn.sigmoid(gates[:, 3 * H:4 * H])
        c = f * c + i * g
        h = o * jnp.tanh(c)
        return (h, c), None

    (h, c), _ = jax.lax.scan(step, (h, c), jnp.transpose(x, (1, 0, 2)))
    return h @ w_fc.T + b_fc


if __name__ == "__main__":
    B, T, D, H = 2, 8, 16, 32   # batch, seq, input_size, n_units

    key = jax.random.PRNGKey(0)
    ks = jax.random.split(key, 7)
    bound = 1.0 / np.sqrt(H)    # PyTorch LSTM / Linear default uniform bound
    w_ih = jax.random.uniform(ks[0], (4 * H, D), jnp.float32, -bound, bound)
    w_hh = jax.random.uniform(ks[1], (4 * H, H), jnp.float32, -bound, bound)
    b_ih = jax.random.uniform(ks[2], (4 * H,), jnp.float32, -bound, bound)
    b_hh = jax.random.uniform(ks[3], (4 * H,), jnp.float32, -bound, bound)
    w_fc = jax.random.uniform(ks[4], (1, H), jnp.float32, -bound, bound)
    b_fc = jax.random.uniform(ks[5], (1,), jnp.float32, -bound, bound)
    x = jax.random.normal(ks[6], (B, T, D), jnp.float32)

    out = lstm_model_forward(x, w_ih, w_hh, b_ih, b_hh, w_fc, b_fc)
    out = jax.block_until_ready(out)

    ref = _reference_forward(x, w_ih, w_hh, b_ih, b_hh, w_fc, b_fc)
    np.testing.assert_allclose(np.asarray(out), np.asarray(ref),
                               rtol=1e-5, atol=1e-5)
    assert out.shape == (B, 1)
    print("KERNEL_OK")
</pallas_src>

<mosaic_0001>
module attributes {stable_mosaic.version = 11 : i64} {
  func.func @_lstm_kernel(%arg0: memref<64x16xf32, #tpu.memory_space<vmem>>, %arg1: memref<16x128xf32, #tpu.memory_space<vmem>>, %arg2: memref<32x128xf32, #tpu.memory_space<vmem>>, %arg3: memref<1x128xf32, #tpu.memory_space<vmem>>, %arg4: memref<32x1xf32, #tpu.memory_space<vmem>>, %arg5: memref<1x1xf32, #tpu.memory_space<vmem>>, %arg6: memref<8x1xf32, #tpu.memory_space<vmem>>) attributes {dimension_semantics = [], scalar_prefetch = 0 : i64, scratch_operands = 0 : i64, tpu.core_type = #tpu.core_type<tc>} {
    %c0 = arith.constant 0 : index
    %c0_0 = arith.constant 0 : index
    %0 = vector.load %arg0[%c0, %c0_0] : memref<64x16xf32, #tpu.memory_space<vmem>>, vector<64x16xf32>
    %c0_1 = arith.constant 0 : index
    %c0_2 = arith.constant 0 : index
    %1 = vector.load %arg1[%c0_1, %c0_2] : memref<16x128xf32, #tpu.memory_space<vmem>>, vector<16x128xf32>
    %cst = arith.constant dense<0.000000e+00> : vector<64x128xf32>
    %2 = tpu.matmul %0, %1, %cst {dimension_numbers = #tpu.dot_dimension_numbers<[1], [0], [0], [1], [0, 0, 1, 1], [], []>} : vector<64x16xf32>, vector<16x128xf32>, vector<64x128xf32> -> vector<64x128xf32>
    %c0_3 = arith.constant 0 : index
    %c0_4 = arith.constant 0 : index
    %3 = vector.load %arg3[%c0_3, %c0_4] : memref<1x128xf32, #tpu.memory_space<vmem>>, vector<1x128xf32>
    %4 = vector.broadcast %3 : vector<1x128xf32> to vector<64x128xf32>
    %5 = arith.addf %2, %4 : vector<64x128xf32>
    %c0_5 = arith.constant 0 : index
    %c0_6 = arith.constant 0 : index
    %6 = vector.load %arg2[%c0_5, %c0_6] : memref<32x128xf32, #tpu.memory_space<vmem>>, vector<32x128xf32>
    %7 = tpu.iota {dimensions = array<i32: 1>} : vector<8x128xi32>
    %c64_i32 = arith.constant 64 : i32
    %8 = vector.broadcast %c64_i32 : i32 to vector<8x128xi32>
    %9 = arith.cmpi sge, %7, %8 : vector<8x128xi32>
    %c96_i32 = arith.constant 96 : i32
    %10 = vector.broadcast %c96_i32 : i32 to vector<8x128xi32>
    %11 = arith.cmpi slt, %7, %10 : vector<8x128xi32>
    %12 = arith.andi %9, %11 : vector<8x128xi1>
    %cst_7 = arith.constant 1.000000e+00 : f32
    %cst_8 = arith.constant 5.000000e-01 : f32
    %13 = vector.broadcast %cst_7 : f32 to vector<8x128xf32>
    %14 = vector.broadcast %cst_8 : f32 to vector<8x128xf32>
    %15 = arith.select %12, %13, %14 : vector<8x128xi1>, vector<8x128xf32>
    %16 = vector.extract_strided_slice %5 {offsets = [0, 0], sizes = [8, 128], strides = [1, 1]} : vector<64x128xf32> to vector<8x128xf32>
    %17 = arith.mulf %16, %15 : vector<8x128xf32>
    %18 = math.tanh %17 : vector<8x128xf32>
    %cst_9 = arith.constant 5.000000e-01 : f32
    %19 = vector.broadcast %cst_9 : f32 to vector<8x128xf32>
    %20 = arith.mulf %19, %18 : vector<8x128xf32>
    %cst_10 = arith.constant 5.000000e-01 : f32
    %21 = vector.broadcast %cst_10 : f32 to vector<8x128xf32>
    %22 = arith.addf %20, %21 : vector<8x128xf32>
    %23 = arith.select %12, %18, %22 : vector<8x128xi1>, vector<8x128xf32>
    %24 = vector.extract_strided_slice %23 {offsets = [0, 0], sizes = [8, 32], strides = [1, 1]} : vector<8x128xf32> to vector<8x32xf32>
    %25 = vector.extract_strided_slice %23 {offsets = [0, 64], sizes = [8, 32], strides = [1, 1]} : vector<8x128xf32> to vector<8x32xf32>
    %26 = vector.extract_strided_slice %23 {offsets = [0, 96], sizes = [8, 32], strides = [1, 1]} : vector<8x128xf32> to vector<8x32xf32>
    %27 = arith.mulf %24, %25 : vector<8x32xf32>
    %28 = math.tanh %27 : vector<8x32xf32>
    %29 = arith.mulf %26, %28 : vector<8x32xf32>
    %30 = vector.extract_strided_slice %5 {offsets = [8, 0], sizes = [8, 128], strides = [1, 1]} : vector<64x128xf32> to vector<8x128xf32>
    %cst_11 = arith.constant dense<0.000000e+00> : vector<8x128xf32>
    %31 = tpu.matmul %29, %6, %cst_11 {dimension_numbers = #tpu.dot_dimension_numbers<[1], [0], [0], [1], [0, 0, 1, 1], [], []>} : vector<8x32xf32>, vector<32x128xf32>, vector<8x128xf32> -> vector<8x128xf32>
    %32 = arith.addf %30, %31 : vector<8x128xf32>
    %33 = arith.mulf %32, %15 : vector<8x128xf32>
    %34 = math.tanh %33 : vector<8x128xf32>
    %cst_12 = arith.constant 5.000000e-01 : f32
    %35 = vector.broadcast %cst_12 : f32 to vector<8x128xf32>
    %36 = arith.mulf %35, %34 : vector<8x128xf32>
    %cst_13 = arith.constant 5.000000e-01 : f32
    %37 = vector.broadcast %cst_13 : f32 to vector<8x128xf32>
    %38 = arith.addf %36, %37 : vector<8x128xf32>
    %39 = arith.select %12, %34, %38 : vector<8x128xi1>, vector<8x128xf32>
    %40 = vector.extract_strided_slice %39 {offsets = [0, 0], sizes = [8, 32], strides = [1, 1]} : vector<8x128xf32> to vector<8x32xf32>
    %41 = vector.extract_strided_slice %39 {offsets = [0, 32], sizes = [8, 32], strides = [1, 1]} : vector<8x128xf32> to vector<8x32xf32>
    %42 = vector.extract_strided_slice %39 {offsets = [0, 64], sizes = [8, 32], strides = [1, 1]} : vector<8x128xf32> to vector<8x32xf32>
    %43 = vector.extract_strided_slice %39 {offsets = [0, 96], sizes = [8, 32], strides = [1, 1]} : vector<8x128xf32> to vector<8x32xf32>
    %44 = arith.mulf %41, %27 : vector<8x32xf32>
    %45 = arith.mulf %40, %42 : vector<8x32xf32>
    %46 = arith.addf %44, %45 : vector<8x32xf32>
    %47 = math.tanh %46 : vector<8x32xf32>
    %48 = arith.mulf %43, %47 : vector<8x32xf32>
    %49 = vector.extract_strided_slice %5 {offsets = [16, 0], sizes = [8, 128], strides = [1, 1]} : vector<64x128xf32> to vector<8x128xf32>
    %cst_14 = arith.constant dense<0.000000e+00> : vector<8x128xf32>
    %50 = tpu.matmul %48, %6, %cst_14 {dimension_numbers = #tpu.dot_dimension_numbers<[1], [0], [0], [1], [0, 0, 1, 1], [], []>} : vector<8x32xf32>, vector<32x128xf32>, vector<8x128xf32> -> vector<8x128xf32>
    %51 = arith.addf %49, %50 : vector<8x128xf32>
    %52 = arith.mulf %51, %15 : vector<8x128xf32>
    %53 = math.tanh %52 : vector<8x128xf32>
    %cst_15 = arith.constant 5.000000e-01 : f32
    %54 = vector.broadcast %cst_15 : f32 to vector<8x128xf32>
    %55 = arith.mulf %54, %53 : vector<8x128xf32>
    %cst_16 = arith.constant 5.000000e-01 : f32
    %56 = vector.broadcast %cst_16 : f32 to vector<8x128xf32>
    %57 = arith.addf %55, %56 : vector<8x128xf32>
    %58 = arith.select %12, %53, %57 : vector<8x128xi1>, vector<8x128xf32>
    %59 = vector.extract_strided_slice %58 {offsets = [0, 0], sizes = [8, 32], strides = [1, 1]} : vector<8x128xf32> to vector<8x32xf32>
    %60 = vector.extract_strided_slice %58 {offsets = [0, 32], sizes = [8, 32], strides = [1, 1]} : vector<8x128xf32> to vector<8x32xf32>
    %61 = vector.extract_strided_slice %58 {offsets = [0, 64], sizes = [8, 32], strides = [1, 1]} : vector<8x128xf32> to vector<8x32xf32>
    %62 = vector.extract_strided_slice %58 {offsets = [0, 96], sizes = [8, 32], strides = [1, 1]} : vector<8x128xf32> to vector<8x32xf32>
    %63 = arith.mulf %60, %46 : vector<8x32xf32>
    %64 = arith.mulf %59, %61 : vector<8x32xf32>
    %65 = arith.addf %63, %64 : vector<8x32xf32>
    %66 = math.tanh %65 : vector<8x32xf32>
    %67 = arith.mulf %62, %66 : vector<8x32xf32>
    %68 = vector.extract_strided_slice %5 {offsets = [24, 0], sizes = [8, 128], strides = [1, 1]} : vector<64x128xf32> to vector<8x128xf32>
    %cst_17 = arith.constant dense<0.000000e+00> : vector<8x128xf32>
    %69 = tpu.matmul %67, %6, %cst_17 {dimension_numbers = #tpu.dot_dimension_numbers<[1], [0], [0], [1], [0, 0, 1, 1], [], []>} : vector<8x32xf32>, vector<32x128xf32>, vector<8x128xf32> -> vector<8x128xf32>
    %70 = arith.addf %68, %69 : vector<8x128xf32>
    %71 = arith.mulf %70, %15 : vector<8x128xf32>
    %72 = math.tanh %71 : vector<8x128xf32>
    %cst_18 = arith.constant 5.000000e-01 : f32
    %73 = vector.broadcast %cst_18 : f32 to vector<8x128xf32>
    %74 = arith.mulf %73, %72 : vector<8x128xf32>
    %cst_19 = arith.constant 5.000000e-01 : f32
    %75 = vector.broadcast %cst_19 : f32 to vector<8x128xf32>
    %76 = arith.addf %74, %75 : vector<8x128xf32>
    %77 = arith.select %12, %72, %76 : vector<8x128xi1>, vector<8x128xf32>
    %78 = vector.extract_strided_slice %77 {offsets = [0, 0], sizes = [8, 32], strides = [1, 1]} : vector<8x128xf32> to vector<8x32xf32>
    %79 = vector.extract_strided_slice %77 {offsets = [0, 32], sizes = [8, 32], strides = [1, 1]} : vector<8x128xf32> to vector<8x32xf32>
    %80 = vector.extract_strided_slice %77 {offsets = [0, 64], sizes = [8, 32], strides = [1, 1]} : vector<8x128xf32> to vector<8x32xf32>
    %81 = vector.extract_strided_slice %77 {offsets = [0, 96], sizes = [8, 32], strides = [1, 1]} : vector<8x128xf32> to vector<8x32xf32>
    %82 = arith.mulf %79, %65 : vector<8x32xf32>
    %83 = arith.mulf %78, %80 : vector<8x32xf32>
    %84 = arith.addf %82, %83 : vector<8x32xf32>
    %85 = math.tanh %84 : vector<8x32xf32>
    %86 = arith.mulf %81, %85 : vector<8x32xf32>
    %87 = vector.extract_strided_slice %5 {offsets = [32, 0], sizes = [8, 128], strides = [1, 1]} : vector<64x128xf32> to vector<8x128xf32>
    %cst_20 = arith.constant dense<0.000000e+00> : vector<8x128xf32>
    %88 = tpu.matmul %86, %6, %cst_20 {dimension_numbers = #tpu.dot_dimension_numbers<[1], [0], [0], [1], [0, 0, 1, 1], [], []>} : vector<8x32xf32>, vector<32x128xf32>, vector<8x128xf32> -> vector<8x128xf32>
    %89 = arith.addf %87, %88 : vector<8x128xf32>
    %90 = arith.mulf %89, %15 : vector<8x128xf32>
    %91 = math.tanh %90 : vector<8x128xf32>
    %cst_21 = arith.constant 5.000000e-01 : f32
    %92 = vector.broadcast %cst_21 : f32 to vector<8x128xf32>
    %93 = arith.mulf %92, %91 : vector<8x128xf32>
    %cst_22 = arith.constant 5.000000e-01 : f32
    %94 = vector.broadcast %cst_22 : f32 to vector<8x128xf32>
    %95 = arith.addf %93, %94 : vector<8x128xf32>
    %96 = arith.select %12, %91, %95 : vector<8x128xi1>, vector<8x128xf32>
    %97 = vector.extract_strided_slice %96 {offsets = [0, 0], sizes = [8, 32], strides = [1, 1]} : vector<8x128xf32> to vector<8x32xf32>
    %98 = vector.extract_strided_slice %96 {offsets = [0, 32], sizes = [8, 32], strides = [1, 1]} : vector<8x128xf32> to vector<8x32xf32>
    %99 = vector.extract_strided_slice %96 {offsets = [0, 64], sizes = [8, 32], strides = [1, 1]} : vector<8x128xf32> to vector<8x32xf32>
    %100 = vector.extract_strided_slice %96 {offsets = [0, 96], sizes = [8, 32], strides = [1, 1]} : vector<8x128xf32> to vector<8x32xf32>
    %101 = arith.mulf %98, %84 : vector<8x32xf32>
    %102 = arith.mulf %97, %99 : vector<8x32xf32>
    %103 = arith.addf %101, %102 : vector<8x32xf32>
    %104 = math.tanh %103 : vector<8x32xf32>
    %105 = arith.mulf %100, %104 : vector<8x32xf32>
    %106 = vector.extract_strided_slice %5 {offsets = [40, 0], sizes = [8, 128], strides = [1, 1]} : vector<64x128xf32> to vector<8x128xf32>
    %cst_23 = arith.constant dense<0.000000e+00> : vector<8x128xf32>
    %107 = tpu.matmul %105, %6, %cst_23 {dimension_numbers = #tpu.dot_dimension_numbers<[1], [0], [0], [1], [0, 0, 1, 1], [], []>} : vector<8x32xf32>, vector<32x128xf32>, vector<8x128xf32> -> vector<8x128xf32>
    %108 = arith.addf %106, %107 : vector<8x128xf32>
    %109 = arith.mulf %108, %15 : vector<8x128xf32>
    %110 = math.tanh %109 : vector<8x128xf32>
    %cst_24 = arith.constant 5.000000e-01 : f32
    %111 = vector.broadcast %cst_24 : f32 to vector<8x128xf32>
    %112 = arith.mulf %111, %110 : vector<8x128xf32>
    %cst_25 = arith.constant 5.000000e-01 : f32
    %113 = vector.broadcast %cst_25 : f32 to vector<8x128xf32>
    %114 = arith.addf %112, %113 : vector<8x128xf32>
    %115 = arith.select %12, %110, %114 : vector<8x128xi1>, vector<8x128xf32>
    %116 = vector.extract_strided_slice %115 {offsets = [0, 0], sizes = [8, 32], strides = [1, 1]} : vector<8x128xf32> to vector<8x32xf32>
    %117 = vector.extract_strided_slice %115 {offsets = [0, 32], sizes = [8, 32], strides = [1, 1]} : vector<8x128xf32> to vector<8x32xf32>
    %118 = vector.extract_strided_slice %115 {offsets = [0, 64], sizes = [8, 32], strides = [1, 1]} : vector<8x128xf32> to vector<8x32xf32>
    %119 = vector.extract_strided_slice %115 {offsets = [0, 96], sizes = [8, 32], strides = [1, 1]} : vector<8x128xf32> to vector<8x32xf32>
    %120 = arith.mulf %117, %103 : vector<8x32xf32>
    %121 = arith.mulf %116, %118 : vector<8x32xf32>
    %122 = arith.addf %120, %121 : vector<8x32xf32>
    %123 = math.tanh %122 : vector<8x32xf32>
    %124 = arith.mulf %119, %123 : vector<8x32xf32>
    %125 = vector.extract_strided_slice %5 {offsets = [48, 0], sizes = [8, 128], strides = [1, 1]} : vector<64x128xf32> to vector<8x128xf32>
    %cst_26 = arith.constant dense<0.000000e+00> : vector<8x128xf32>
    %126 = tpu.matmul %124, %6, %cst_26 {dimension_numbers = #tpu.dot_dimension_numbers<[1], [0], [0], [1], [0, 0, 1, 1], [], []>} : vector<8x32xf32>, vector<32x128xf32>, vector<8x128xf32> -> vector<8x128xf32>
    %127 = arith.addf %125, %126 : vector<8x128xf32>
    %128 = arith.mulf %127, %15 : vector<8x128xf32>
    %129 = math.tanh %128 : vector<8x128xf32>
    %cst_27 = arith.constant 5.000000e-01 : f32
    %130 = vector.broadcast %cst_27 : f32 to vector<8x128xf32>
    %131 = arith.mulf %130, %129 : vector<8x128xf32>
    %cst_28 = arith.constant 5.000000e-01 : f32
    %132 = vector.broadcast %cst_28 : f32 to vector<8x128xf32>
    %133 = arith.addf %131, %132 : vector<8x128xf32>
    %134 = arith.select %12, %129, %133 : vector<8x128xi1>, vector<8x128xf32>
    %135 = vector.extract_strided_slice %134 {offsets = [0, 0], sizes = [8, 32], strides = [1, 1]} : vector<8x128xf32> to vector<8x32xf32>
    %136 = vector.extract_strided_slice %134 {offsets = [0, 32], sizes = [8, 32], strides = [1, 1]} : vector<8x128xf32> to vector<8x32xf32>
    %137 = vector.extract_strided_slice %134 {offsets = [0, 64], sizes = [8, 32], strides = [1, 1]} : vector<8x128xf32> to vector<8x32xf32>
    %138 = vector.extract_strided_slice %134 {offsets = [0, 96], sizes = [8, 32], strides = [1, 1]} : vector<8x128xf32> to vector<8x32xf32>
    %139 = arith.mulf %136, %122 : vector<8x32xf32>
    %140 = arith.mulf %135, %137 : vector<8x32xf32>
    %141 = arith.addf %139, %140 : vector<8x32xf32>
    %142 = math.tanh %141 : vector<8x32xf32>
    %143 = arith.mulf %138, %142 : vector<8x32xf32>
    %144 = vector.extract_strided_slice %5 {offsets = [56, 0], sizes = [8, 128], strides = [1, 1]} : vector<64x128xf32> to vector<8x128xf32>
    %cst_29 = arith.constant dense<0.000000e+00> : vector<8x128xf32>
    %145 = tpu.matmul %143, %6, %cst_29 {dimension_numbers = #tpu.dot_dimension_numbers<[1], [0], [0], [1], [0, 0, 1, 1], [], []>} : vector<8x32xf32>, vector<32x128xf32>, vector<8x128xf32> -> vector<8x128xf32>
    %146 = arith.addf %144, %145 : vector<8x128xf32>
    %147 = arith.mulf %146, %15 : vector<8x128xf32>
    %148 = math.tanh %147 : vector<8x128xf32>
    %cst_30 = arith.constant 5.000000e-01 : f32
    %149 = vector.broadcast %cst_30 : f32 to vector<8x128xf32>
    %150 = arith.mulf %149, %148 : vector<8x128xf32>
    %cst_31 = arith.constant 5.000000e-01 : f32
    %151 = vector.broadcast %cst_31 : f32 to vector<8x128xf32>
    %152 = arith.addf %150, %151 : vector<8x128xf32>
    %153 = arith.select %12, %148, %152 : vector<8x128xi1>, vector<8x128xf32>
    %154 = vector.extract_strided_slice %153 {offsets = [0, 0], sizes = [8, 32], strides = [1, 1]} : vector<8x128xf32> to vector<8x32xf32>
    %155 = vector.extract_strided_slice %153 {offsets = [0, 32], sizes = [8, 32], strides = [1, 1]} : vector<8x128xf32> to vector<8x32xf32>
    %156 = vector.extract_strided_slice %153 {offsets = [0, 64], sizes = [8, 32], strides = [1, 1]} : vector<8x128xf32> to vector<8x32xf32>
    %157 = vector.extract_strided_slice %153 {offsets = [0, 96], sizes = [8, 32], strides = [1, 1]} : vector<8x128xf32> to vector<8x32xf32>
    %158 = arith.mulf %155, %141 : vector<8x32xf32>
    %159 = arith.mulf %154, %156 : vector<8x32xf32>
    %160 = arith.addf %158, %159 : vector<8x32xf32>
    %161 = math.tanh %160 : vector<8x32xf32>
    %162 = arith.mulf %157, %161 : vector<8x32xf32>
    %c0_32 = arith.constant 0 : index
    %c0_33 = arith.constant 0 : index
    %163 = vector.load %arg4[%c0_32, %c0_33] : memref<32x1xf32, #tpu.memory_space<vmem>>, vector<32x1xf32>
    %cst_34 = arith.constant dense<0.000000e+00> : vector<8x1xf32>
    %164 = tpu.matmul %162, %163, %cst_34 {dimension_numbers = #tpu.dot_dimension_numbers<[1], [0], [0], [1], [0, 0, 1, 1], [], []>} : vector<8x32xf32>, vector<32x1xf32>, vector<8x1xf32> -> vector<8x1xf32>
    %c0_35 = arith.constant 0 : index
    %c0_36 = arith.constant 0 : index
    %165 = vector.load %arg5[%c0_35, %c0_36] : memref<1x1xf32, #tpu.memory_space<vmem>>, vector<1x1xf32>
    %166 = vector.broadcast %165 : vector<1x1xf32> to vector<8x1xf32>
    %167 = arith.addf %164, %166 : vector<8x1xf32>
    %c0_37 = arith.constant 0 : index
    %c0_38 = arith.constant 0 : index
    %168 = vector.load %arg6[%c0_37, %c0_38] : memref<8x1xf32, #tpu.memory_space<vmem>>, vector<8x1xf32>
    tpu.vector_store %arg6[%c0_37, %c0_38], %167 {strides = array<i32>} : memref<8x1xf32, #tpu.memory_space<vmem>>, vector<8x1xf32>,
    return
  }
}

</mosaic_0001>

<bundles_post_ra>
// kernel: lstm_model_forward.1
= control target key start
LH: loop header
LB: loop body
LE: loop exit
PB: predicated region body
PF: predicated region fallthrough
CT: control target
= control target key end

     0   :  { %vm42_vm0 = vcmask 130048   ;;  %v176_v5 = vlaneseq  ;;  %v1244_v11 = vmov 0.5   ;;  %v1246_v21 = vmov 0.0|0.0   ;;  %s1250_s14 = smov 32   ;;  %s1497_s1 = inlined_call_operand.vmem [shape: f32[16,128], index: 1, kind: input, shape index: {}]   ;;  %s1498_s0 = inlined_call_operand.vmem [shape: f32[64,16], index: 0, kind: input, shape index: {}]   ;;  %s1499_s3 = inlined_call_operand.vmem [shape: f32[1,128], index: 3, kind: input, shape index: {}]   ;;  %s1500_s2 = inlined_call_operand.vmem [shape: f32[32,128], index: 2, kind: input, shape index: {}]   ;;  %s1501_s4 = inlined_call_operand.vmem [shape: f32[32,1], index: 4, kind: input, shape index: {}]   ;;  %s1502_s5 = inlined_call_operand.<no memory space> [shape: f32[1,1], index: 5, kind: input, shape index: {}]   ;;  %s1503_s6 = inlined_call_operand.vmem [shape: f32[8,1], index: 6, kind: output, shape index: {}]  }
   0x1   :  { %v33_v0 = vld [vmem:[%s1497_s1] sm:$0xff]  ;;  %v34_v1 = vld [vmem:[%s1497_s1 + $0x8] sm:$0xff]  ;;  %1157 = vmatprep.subr.bf16.mxu1 %v1246_v21  ;;  %v174_v24 = vld [vmem:[%s1500_s2 + $0x10] sm:$0xff]  ;;  %vm1247_vm4 = vmmov 0   ;;  %v1248_v25 = vmov 0.0   ;;  %vm201_vm5 = vcmask 261120  }
   0x2   :  { %v25_v2 = vld [vmem:[%s1498_s0] sm:$0xff]  ;;  %v1153_v3 = vpack.c.bf16 %v34_v1, %v33_v0  ;;  %v26_v4 = vld [vmem:[%s1498_s0 + $0x8] sm:$0xff]  ;;  %v177_v6 = vand.u32 127, %v176_v5  ;;  %1073 = vmatprep.mubr.msk.f32.mxu1 %vm1247_vm4, %v1248_v25  ;;  %v175_v27 = vld [vmem:[%s1500_s2 + $0x18] sm:$0xff]  ;;  %vm975_vm6 = vcmask 7168  }
   0x3   :  { %1053 = vmatprep.mubr.msk.f32.mxu0 %vm42_vm0, %v25_v2  ;;  %v1307_v8 = vld [vmem:[%s1499_s3] ss:$0 sm:$0xff]  ;;  %s1245_s3 = smov 64   ;;  %v173_v23 = vld [vmem:[%s1500_s2 + $0x8] sm:$0xff]  ;;  %v1337_v28 = vpack.c.bf16 %v175_v27, %v174_v24  ;;  %v27_v48 = vld [vmem:[%s1498_s0 + $0x10] sm:$0xff] }
   0x4   :  { %1154 = vmatprep.subr.bf16.mxu0 %v1153_v3  ;;  %vm178_vm1 = vcmp.ge.s32.totalorder %v177_v6, 64  ;;  %vm179_vm2 = vcmp.lt.s32.totalorder %v177_v6, 96  ;;  %v172_v22 = vld [vmem:[%s1500_s2] sm:$0xff]  ;;  %s1249_s2 = smov 96   ;;  %v28_v49 = vld [vmem:[%s1498_s0 + $0x18] sm:$0xff]  ;;  %v891_v7 = vld [vmem:[%s1501_s4 + $0x10] sm:$0xff] }
   0x5   :  { %1156 = vmatpush3.bf16.msra.mxu0 %v1153_v3  ;;  %vm1300_vm3 = vmand %vm178_vm1, %vm179_vm2  ;;  %v1330_v26 = vpack.c.bf16 %v173_v23, %v172_v22  ;;  %v29_v6 = vld [vmem:[%s1498_s0 + $0x20] sm:$0xff] }
   0x6   :  { %v1311_v12 = vsel %vm1300_vm3, 1.0, %v1244_v11  ;;  %1169 = vmatprep.subr.bf16.mxu0 %v1246_v21  ;;  %v32_v11 = vld [vmem:[%s1498_s0 + $0x38] sm:$0xff] }
   0x7   :  { %1159 = vmatpush3.bf16.msra.mxu1 %v1330_v26 }
   0x8   :  { %1054 = vmatmul.mubr.msk.f32.vlgmr.msra.gmra.mrb[0].mxu0 %vm42_vm0, %v26_v4  ;;  %1160 = vmatprep.subr.bf16.mxu1 %v1246_v21 }
   0x9   :  { %1171 = vmatpush3.bf16.msra.mxu0 %v1330_v26  ;;  %1056 = vmatprep.mubr.msk.f32.mxu0 %vm42_vm0, %v27_v48 }
   0xa   :  { %1172 = vmatprep.subr.bf16.mxu0 %v1246_v21 }
   0xb   :  { %1162 = vmatpush3.bf16.msra.mxu1 %v1337_v28 }
   0xc   :  { %1163 = vmatprep.subr.bf16.mxu1 %v1246_v21  ;;  %1057 = vmatmul.mubr.msk.f32.gmra.mrb[2].mxu0 %vm42_vm0, %v28_v49 }
   0xd   :  { %1174 = vmatpush3.bf16.msra.mxu0 %v1337_v28  ;;  %1059 = vmatprep.mubr.msk.f32.mxu0 %vm42_vm0, %v29_v6 }
   0xe   :  { %1181 = vmatprep.subr.bf16.mxu0 %v1246_v21 }
  0xdb   :  { %v1055_v9 = vpop.f32.mrb[0].mxu0 }
  0xdc   :  { %v133_v10 = vpop.f32.mrb[1].mxu0  ;;  %v139_v33 = vadd.f32 %v1055_v9, %v1307_v8  ;;  %v30_v9 = vld [vmem:[%s1498_s0 + $0x28] sm:$0xff] }
  0xdd   :  { %v134_v13 = vadd.f32 %v1307_v8, %v133_v10  ;;  %v31_v10 = vld [vmem:[%s1498_s0 + $0x30] sm:$0xff]  ;;  %1060 = vmatmul.mubr.msk.f32.gmra.mrb[4].mxu0 %vm42_vm0, %v30_v9 }
  0xde   :  { %1062 = vmatprep.mubr.msk.f32.mxu0 %vm42_vm0, %v31_v10 }
  0xdf   :  { %v182_v14 = vmul.f32 %v1311_v12, %v134_v13  ;;  %v1058_v53 = vpop.f32.mrb[2].mxu0 }
  0xe0   :  { %v143_v54 = vpop.f32.mrb[3].mxu0  ;;  %v149_v22 = vadd.f32 %v1058_v53, %v1307_v8 }
  0xe1   :  { %1212 = vtanh.f32 %v182_v14  ;;  %v144_v56 = vadd.f32 %v1307_v8, %v143_v54  ;;  %1063 = vmatmul.mubr.msk.f32.gmra.mrb[6].mxu0 %vm42_vm0, %v32_v11 }
  0xe2   :  { %1095 = vmatprep.mubr.msk.f32.mxu0 %vm1247_vm4, %v1248_v25 }
  0xeb   :  { %v1213_v15 = vpop.eup %1212 }
  0xec   :  { %v184_v16 = vmul.f32 0.5, %v1213_v15 }
  0xee   :  { %v185_v17 = vadd.f32 0.5, %v184_v16 }
  0xf0   :  { %v186_v18 = vsel %vm1300_vm3, %v1213_v15, %v185_v17 }
  0xf1   :  { %188 = vrot.lane.b32.xlu0 %v186_v18, %s1245_s3 }
 0x163   :  { %v189_v19 = vpop.permute.xlu0 %188 }
 0x164   :  { %v191_v20 = vmul.f32 %v189_v19, %v186_v18 }
 0x166   :  { %1214 = vtanh.f32 %v191_v20 }
 0x170   :  { %v1215_v29 = vpop.eup %1214 }
 0x171   :  { %194 = vrot.lane.b32.xlu0 %v1215_v29, %s1249_s2 }
 0x175   :  { %281 = vrot.lane.b32.xlu0 %v191_v20, %s1250_s14 }
 0x1b0   :  { %v1404_v16 = vpop.f32.mrb[4].mxu0 }
 0x1b1   :  { %v153_v17 = vpop.f32.mrb[5].mxu0 }
 0x1e3   :  { %v195_v30 = vpop.permute.xlu0 %194 }
 0x1e4   :  { %v197_v31 = vmul.f32 %v195_v30, %v186_v18  ;;  %v1406_v18 = vpop.f32.mrb[6].mxu0 }
 0x1e5   :  { %v1408_v19 = vpop.f32.mrb[7].mxu0 }
 0x1e6   :  { %199 = vrot.lane.b32.xlu1 %v197_v31, %s1250_s14 }
 0x1e7   :  { %v282_v44 = vpop.permute.xlu0 %281 }
 0x258   :  { %v200_v32 = vpop.permute.xlu1 %199 }
 0x259   :  { %1074 = vmatmul.mubr.msk.f32.vlgmr.msra.gmra.mrb[0].mxu1 %vm201_vm5, %v200_v32 }
 0x25a   :  { %1165 = vmatpush3.bf16.msra.mxu1 %v1330_v26  ;;  %1084 = vmatprep.mubr.msk.f32.mxu1 %vm1247_vm4, %v1248_v25 }
 0x25b   :  { %1166 = vmatprep.subr.bf16.mxu1 %v1246_v21 }
 0x25e   :  { %1168 = vmatpush3.bf16.msra.mxu1 %v1337_v28 }
 0x25f   :  { %1175 = vmatprep.subr.bf16.mxu1 %v1246_v21 }
 0x32c   :  { %v270_v34 = vpop.f32.mrb[0].mxu1 }
 0x32d   :  { %v274_v35 = vadd.f32 %v270_v34, %v139_v33  ;;  %v1075_v36 = vpop.f32.mrb[1].mxu1 }
 0x32f   :  { %v275_v37 = vmul.f32 %v274_v35, %v1311_v12 }
 0x331   :  { %1216 = vtanh.f32 %v275_v37 }
 0x33b   :  { %v1217_v38 = vpop.eup %1216 }
 0x33c   :  { %v277_v39 = vmul.f32 0.5, %v1217_v38 }
 0x33e   :  { %v278_v40 = vadd.f32 0.5, %v277_v39 }
 0x340   :  { %v279_v41 = vsel %vm1300_vm3, %v1217_v38, %v278_v40 }
 0x341   :  { %286 = vrot.lane.b32.xlu1 %v279_v41, %s1245_s3  ;;  %v284_v45 = vmul.f32 %v282_v44, %v279_v41 }
 0x3b3   :  { %v287_v42 = vpop.permute.xlu1 %286 }
 0x3b4   :  { %v289_v43 = vmul.f32 %v287_v42, %v279_v41 }
 0x3b6   :  { %291 = vrot.lane.b32.xlu1 %v289_v43, %s1250_s14  ;;  %v154_v43 = vadd.f32 %v1307_v8, %v153_v17 }
 0x428   :  { %v292_v46 = vpop.permute.xlu1 %291 }
 0x429   :  { %v294_v47 = vadd.f32 %v292_v46, %v284_v45 }
 0x42b   :  { %1218 = vtanh.f32 %v294_v47 }
 0x435   :  { %v1219_v50 = vpop.eup %1218 }
 0x436   :  { %297 = vrot.lane.b32.xlu0 %v1219_v50, %s1245_s3 }
 0x4a8   :  { %v298_v51 = vpop.permute.xlu0 %297 }
 0x4a9   :  { %v300_v52 = vmul.f32 %v298_v51, %v279_v41 }
 0x4ab   :  { %302 = vrot.lane.b32.xlu1 %v300_v52, %s1250_s14 }
 0x51d   :  { %v303_v55 = vpop.permute.xlu1 %302 }
 0x51e   :  { %1085 = vmatmul.mubr.msk.f32.vlgmr.msra.gmra.mrb[2].mxu1 %vm201_vm5, %v303_v55 }
 0x51f   :  { %1177 = vmatpush3.bf16.msra.mxu1 %v1330_v26  ;;  %1106 = vmatprep.mubr.msk.f32.mxu1 %vm1247_vm4, %v1248_v25 }
 0x520   :  { %1178 = vmatprep.subr.bf16.mxu1 %v1246_v21 }
 0x523   :  { %1180 = vmatpush3.bf16.msra.mxu1 %v1337_v28 }
 0x524   :  { %1187 = vmatprep.subr.bf16.mxu1 %v1246_v21 }
 0x5f1   :  { %v372_v57 = vpop.f32.mrb[2].mxu1 }
 0x5f2   :  { %v376_v58 = vadd.f32 %v372_v57, %v144_v56  ;;  %v1086_v59 = vpop.f32.mrb[3].mxu1 }
 0x5f4   :  { %v377_v60 = vmul.f32 %v376_v58, %v1311_v12 }
 0x5f6   :  { %1220 = vtanh.f32 %v377_v60 }
 0x600   :  { %v1221_v61 = vpop.eup %1220 }
 0x601   :  { %v379_v62 = vmul.f32 0.5, %v1221_v61 }
 0x603   :  { %v380_v63 = vadd.f32 0.5, %v379_v62 }
 0x605   :  { %v381_v0 = vsel %vm1300_vm3, %v1221_v61, %v380_v63  ;;  %v159_v61 = vadd.f32 %v1404_v16, %v1307_v8  ;;  %v164_v16 = vadd.f32 %v1307_v8, %v1408_v19 }
 0x606   :  { %384 = vrot.lane.b32.xlu0 %v381_v0, %s1245_s3  ;;  %v382_v3 = vmul.f32 %v381_v0, %v294_v47 }
 0x678   :  { %v385_v1 = vpop.permute.xlu0 %384 }
 0x679   :  { %v387_v2 = vmul.f32 %v385_v1, %v381_v0 }
 0x67b   :  { %389 = vrot.lane.b32.xlu1 %v387_v2, %s1250_s14 }
 0x6ed   :  { %v390_v4 = vpop.permute.xlu1 %389 }
 0x6ee   :  { %v392_v5 = vadd.f32 %v390_v4, %v382_v3 }
 0x6f0   :  { %1222 = vtanh.f32 %v392_v5 }
 0x6fa   :  { %v1223_v13 = vpop.eup %1222 }
 0x6fb   :  { %395 = vrot.lane.b32.xlu0 %v1223_v13, %s1245_s3 }
 0x76d   :  { %v396_v14 = vpop.permute.xlu0 %395 }
 0x76e   :  { %v398_v15 = vmul.f32 %v396_v14, %v381_v0 }
 0x770   :  { %400 = vrot.lane.b32.xlu1 %v398_v15, %s1250_s14 }
 0x7e2   :  { %v401_v20 = vpop.permute.xlu1 %400 }
 0x7e3   :  { %1096 = vmatmul.mubr.msk.f32.vlgmr.msra.gmra.mrb[8].mxu0 %vm201_vm5, %v401_v20 }
 0x7e4   :  { %1183 = vmatpush3.bf16.msra.mxu0 %v1330_v26  ;;  %1117 = vmatprep.mubr.msk.f32.mxu0 %vm1247_vm4, %v1248_v25 }
 0x7e5   :  { %1184 = vmatprep.subr.bf16.mxu0 %v1246_v21 }
 0x7e8   :  { %1186 = vmatpush3.bf16.msra.mxu0 %v1337_v28 }
 0x7e9   :  { %1193 = vmatprep.subr.bf16.mxu0 %v1246_v21 }
 0x8b6   :  { %v470_v23 = vpop.f32.mrb[8].mxu0 }
 0x8b7   :  { %v474_v24 = vadd.f32 %v470_v23, %v149_v22  ;;  %v1097_v27 = vpop.f32.mrb[9].mxu0 }
 0x8b9   :  { %v475_v29 = vmul.f32 %v474_v24, %v1311_v12 }
 0x8bb   :  { %1224 = vtanh.f32 %v475_v29 }
 0x8c5   :  { %v1225_v30 = vpop.eup %1224 }
 0x8c6   :  { %v477_v31 = vmul.f32 0.5, %v1225_v30 }
 0x8c8   :  { %v478_v32 = vadd.f32 0.5, %v477_v31 }
 0x8ca   :  { %v479_v33 = vsel %vm1300_vm3, %v1225_v30, %v478_v32 }
 0x8cb   :  { %482 = vrot.lane.b32.xlu0 %v479_v33, %s1245_s3  ;;  %v480_v36 = vmul.f32 %v479_v33, %v392_v5 }
 0x93d   :  { %v483_v34 = vpop.permute.xlu0 %482 }
 0x93e   :  { %v485_v35 = vmul.f32 %v483_v34, %v479_v33 }
 0x940   :  { %487 = vrot.lane.b32.xlu1 %v485_v35, %s1250_s14 }
 0x9b2   :  { %v488_v37 = vpop.permute.xlu1 %487 }
 0x9b3   :  { %v490_v38 = vadd.f32 %v488_v37, %v480_v36 }
 0x9b5   :  { %1226 = vtanh.f32 %v490_v38 }
 0x9bf   :  { %v1227_v39 = vpop.eup %1226 }
 0x9c0   :  { %493 = vrot.lane.b32.xlu0 %v1227_v39, %s1245_s3 }
 0xa32   :  { %v494_v40 = vpop.permute.xlu0 %493 }
 0xa33   :  { %v496_v41 = vmul.f32 %v494_v40, %v479_v33 }
 0xa35   :  { %498 = vrot.lane.b32.xlu1 %v496_v41, %s1250_s14 }
 0xaa7   :  { %v499_v42 = vpop.permute.xlu1 %498 }
 0xaa8   :  { %1107 = vmatmul.mubr.msk.f32.vlgmr.msra.gmra.mrb[4].mxu1 %vm201_vm5, %v499_v42 }
 0xaa9   :  { %1189 = vmatpush3.bf16.msra.mxu1 %v1330_v26  ;;  %1128 = vmatprep.mubr.msk.f32.mxu1 %vm1247_vm4, %v1248_v25 }
 0xaaa   :  { %1190 = vmatprep.subr.bf16.mxu1 %v1246_v21 }
 0xaad   :  { %1192 = vmatpush3.bf16.msra.mxu1 %v1337_v28 }
 0xaae   :  { %1199 = vmatprep.subr.bf16.mxu1 %v1246_v21 }
 0xb7b   :  { %v568_v44 = vpop.f32.mrb[4].mxu1 }
 0xb7c   :  { %v572_v45 = vadd.f32 %v568_v44, %v154_v43  ;;  %v1108_v46 = vpop.f32.mrb[5].mxu1 }
 0xb7e   :  { %v573_v47 = vmul.f32 %v572_v45, %v1311_v12 }
 0xb80   :  { %1228 = vtanh.f32 %v573_v47 }
 0xb8a   :  { %v1229_v48 = vpop.eup %1228 }
 0xb8b   :  { %v575_v49 = vmul.f32 0.5, %v1229_v48 }
 0xb8d   :  { %v576_v50 = vadd.f32 0.5, %v575_v49 }
 0xb8f   :  { %v577_v51 = vsel %vm1300_vm3, %v1229_v48, %v576_v50  ;;  %v890_v50 = vld [vmem:[%s1501_s4 + $0x8] sm:$0xff] }
 0xb90   :  { %580 = vrot.lane.b32.xlu0 %v577_v51, %s1245_s3  ;;  %v578_v54 = vmul.f32 %v577_v51, %v490_v38  ;;  %v169_v38 = vadd.f32 %v1406_v18, %v1307_v8 }
 0xc02   :  { %v581_v52 = vpop.permute.xlu0 %580 }
 0xc03   :  { %v583_v53 = vmul.f32 %v581_v52, %v577_v51  ;;  %v892_v52 = vld [vmem:[%s1501_s4 + $0x18] sm:$0xff] }
 0xc05   :  { %585 = vrot.lane.b32.xlu1 %v583_v53, %s1250_s14  ;;  %v1203_v53 = vpack.c.bf16 %v892_v52, %v891_v7 }
 0xc77   :  { %v586_v55 = vpop.permute.xlu1 %585 }
 0xc78   :  { %v588_v56 = vadd.f32 %v586_v55, %v578_v54  ;;  %v11_v55 = vstv %s1502_s5 }
 0xc79   :  { %12 = vst [vmem:[#allocation2] sm:$0x1] %v11_v55 }
 0xc7a   :  { %1230 = vtanh.f32 %v588_v56 }
 0xc84   :  { %v1231_v57 = vpop.eup %1230 }
 0xc85   :  { %591 = vrot.lane.b32.xlu0 %v1231_v57, %s1245_s3 }
 0xcf7   :  { %v592_v58 = vpop.permute.xlu0 %591 }
 0xcf8   :  { %v594_v59 = vmul.f32 %v592_v58, %v577_v51 }
 0xcfa   :  { %596 = vrot.lane.b32.xlu1 %v594_v59, %s1250_s14  ;;  %v997_v59 = vld [vmem:[#allocation2] ss:$0 sm:$0xff] }
 0xd6c   :  { %v597_v60 = vpop.permute.xlu1 %596 }
 0xd6d   :  { %1118 = vmatmul.mubr.msk.f32.vlgmr.msra.gmra.mrb[10].mxu0 %vm201_vm5, %v597_v60 }
 0xd6e   :  { %1195 = vmatpush3.bf16.msra.mxu0 %v1330_v26  ;;  %1139 = vmatprep.mubr.msk.f32.mxu0 %vm1247_vm4, %v1248_v25 }
 0xd6f   :  { %1196 = vmatprep.subr.bf16.mxu0 %v1246_v21 }
 0xd72   :  { %1198 = vmatpush3.bf16.msra.mxu0 %v1337_v28 }
 0xe40   :  { %v666_v62 = vpop.f32.mrb[10].mxu0 }
 0xe41   :  { %v670_v63 = vadd.f32 %v666_v62, %v159_v61  ;;  %v1119_v0 = vpop.f32.mrb[11].mxu0 }
 0xe43   :  { %v671_v1 = vmul.f32 %v670_v63, %v1311_v12 }
 0xe45   :  { %1232 = vtanh.f32 %v671_v1 }
 0xe4f   :  { %v1233_v2 = vpop.eup %1232 }
 0xe50   :  { %v673_v3 = vmul.f32 0.5, %v1233_v2 }
 0xe52   :  { %v674_v4 = vadd.f32 0.5, %v673_v3 }
 0xe54   :  { %v675_v26 = vsel %vm1300_vm3, %v1233_v2, %v674_v4 }
 0xe55   :  { %678 = vrot.lane.b32.xlu0 %v675_v26, %s1245_s3  ;;  %v676_v28 = vmul.f32 %v675_v26, %v588_v56 }
 0xec7   :  { %v679_v5 = vpop.permute.xlu0 %678 }
 0xec8   :  { %v681_v6 = vmul.f32 %v679_v5, %v675_v26 }
 0xeca   :  { %683 = vrot.lane.b32.xlu1 %v681_v6, %s1250_s14 }
 0xf3c   :  { %v684_v9 = vpop.permute.xlu1 %683 }
 0xf3d   :  { %v686_v10 = vadd.f32 %v684_v9, %v676_v28 }
 0xf3f   :  { %1234 = vtanh.f32 %v686_v10 }
 0xf49   :  { %v1235_v11 = vpop.eup %1234 }
 0xf4a   :  { %689 = vrot.lane.b32.xlu0 %v1235_v11, %s1245_s3 }
 0xfbc   :  { %v690_v13 = vpop.permute.xlu0 %689 }
 0xfbd   :  { %v692_v14 = vmul.f32 %v690_v13, %v675_v26 }
 0xfbf   :  { %694 = vrot.lane.b32.xlu1 %v692_v14, %s1250_s14 }
0x1031   :  { %v695_v15 = vpop.permute.xlu1 %694 }
0x1032   :  { %1129 = vmatmul.mubr.msk.f32.vlgmr.msra.gmra.mrb[6].mxu1 %vm201_vm5, %v695_v15 }
0x1033   :  { %1150 = vmatprep.mubr.msk.f32.mxu1 %vm1247_vm4, %v1248_v25 }
0x1105   :  { %v764_v17 = vpop.f32.mrb[6].mxu1 }
0x1106   :  { %v768_v20 = vadd.f32 %v764_v17, %v164_v16  ;;  %v1130_v22 = vpop.f32.mrb[7].mxu1 }
0x1108   :  { %v769_v23 = vmul.f32 %v768_v20, %v1311_v12 }
0x110a   :  { %1236 = vtanh.f32 %v769_v23 }
0x1114   :  { %v1237_v24 = vpop.eup %1236 }
0x1115   :  { %v771_v27 = vmul.f32 0.5, %v1237_v24 }
0x1117   :  { %v772_v29 = vadd.f32 0.5, %v771_v27 }
0x1119   :  { %v773_v30 = vsel %vm1300_vm3, %v1237_v24, %v772_v29 }
0x111a   :  { %776 = vrot.lane.b32.xlu0 %v773_v30, %s1245_s3  ;;  %v774_v25 = vmul.f32 %v773_v30, %v686_v10 }
0x118c   :  { %v777_v31 = vpop.permute.xlu0 %776 }
0x118d   :  { %v779_v32 = vmul.f32 %v777_v31, %v773_v30 }
0x118f   :  { %781 = vrot.lane.b32.xlu1 %v779_v32, %s1250_s14 }
0x1201   :  { %v782_v19 = vpop.permute.xlu1 %781 }
0x1202   :  { %v784_v33 = vadd.f32 %v782_v19, %v774_v25 }
0x1204   :  { %1238 = vtanh.f32 %v784_v33 }
0x120e   :  { %v1239_v34 = vpop.eup %1238 }
0x120f   :  { %787 = vrot.lane.b32.xlu0 %v1239_v34, %s1245_s3 }
0x1281   :  { %v788_v35 = vpop.permute.xlu0 %787 }
0x1282   :  { %v790_v36 = vmul.f32 %v788_v35, %v773_v30 }
0x1284   :  { %792 = vrot.lane.b32.xlu1 %v790_v36, %s1250_s14 }
0x12f6   :  { %v793_v37 = vpop.permute.xlu1 %792 }
0x12f7   :  { %1140 = vmatmul.mubr.msk.f32.vlgmr.msra.gmra.mrb[12].mxu0 %vm201_vm5, %v793_v37 }
0x13ca   :  { %v862_v39 = vpop.f32.mrb[12].mxu0 }
0x13cb   :  { %v866_v40 = vadd.f32 %v862_v39, %v169_v38  ;;  %v1141_v41 = vpop.f32.mrb[13].mxu0 }
0x13cd   :  { %v867_v42 = vmul.f32 %v866_v40, %v1311_v12  ;;  %v889_v12 = vld [vmem:[%s1501_s4] sm:$0xff] }
0x13ce   :  { %v1200_v51 = vpack.c.bf16 %v890_v50, %v889_v12 }
0x13cf   :  { %1240 = vtanh.f32 %v867_v42 }
0x13d0   :  { %1201 = vmatpush3.bf16.msra.mxu1 %v1200_v51 }
0x13d1   :  { %1202 = vmatprep.subr.bf16.mxu1 %v1246_v21 }
0x13d4   :  { %1204 = vmatpush3.bf16.msra.mxu1 %v1203_v53 }
0x13d9   :  { %v1241_v43 = vpop.eup %1240 }
0x13da   :  { %v869_v44 = vmul.f32 0.5, %v1241_v43 }
0x13dc   :  { %v870_v45 = vadd.f32 0.5, %v869_v44 }
0x13de   :  { %v871_v46 = vsel %vm1300_vm3, %v1241_v43, %v870_v45 }
0x13df   :  { %874 = vrot.lane.b32.xlu0 %v871_v46, %s1245_s3  ;;  %v872_v49 = vmul.f32 %v871_v46, %v784_v33 }
0x1451   :  { %v875_v47 = vpop.permute.xlu0 %874 }
0x1452   :  { %v877_v48 = vmul.f32 %v875_v47, %v871_v46 }
0x1454   :  { %879 = vrot.lane.b32.xlu1 %v877_v48, %s1250_s14 }
0x14c6   :  { %v880_v8 = vpop.permute.xlu1 %879 }
0x14c7   :  { %v882_v18 = vadd.f32 %v880_v8, %v872_v49 }
0x14c9   :  { %1242 = vtanh.f32 %v882_v18 }
0x14d3   :  { %v1243_v54 = vpop.eup %1242 }
0x14d4   :  { %885 = vrot.lane.b32.xlu0 %v1243_v54, %s1245_s3 }
0x1546   :  { %v886_v56 = vpop.permute.xlu0 %885 }
0x1547   :  { %v888_v57 = vmul.f32 %v886_v56, %v871_v46 }
0x1549   :  { %901 = vrot.lane.b32.xlu1 %v888_v57, %s1250_s14 }
0x15bb   :  { %v902_v58 = vpop.permute.xlu1 %901 }
0x15bc   :  { %1151 = vmatmul.mubr.msk.f32.vlgmr.msra.gmra.mrb[8].mxu1 %vm201_vm5, %v902_v58 }
0x168f   :  { %v971_v60 = vpop.f32.mrb[8].mxu1 }
0x1690   :  { %v972_v21 = vadd.f32 %v997_v59, %v971_v60  ;;  %v1152_v61 = vpop.f32.mrb[9].mxu1 }
0x1692   :  { %976 = vst.msk [vmem:[%s1503_s6] sm:$0xff] %vm975_vm6, %v972_v21 }

</bundles_post_ra>
